<compile_context>
chip_gen: v7x
topology: tpu7x:2x2x1
jax: 0.10.0
libtpu: 0.0.40
codegen_flags: <defaults>
</compile_context>

<pallas_src>
import functools

import jax
import jax.numpy as jnp
from jax.experimental import pallas as pl
from jax.experimental.pallas import tpu as pltpu


# ----------------------------------------------------------------------------
# Pallas kernel: one image per grid step.
#   cT[n] = wT @ x[n]  (+ per-row bias when fused)
# ----------------------------------------------------------------------------
def _upsample_kernel(x_ref, wT_ref, b_ref, o_ref, *, fuse_bias, use_vpu):
    # x_ref : (1, Cin, H*W)            activations for this image
    # wT_ref: (Cout*KH*KW, Cin)        transposed weight matrix
    # b_ref : (Cout*KH*KW, 1)          bias[co] repeated KH*KW times per row
    # o_ref : (1, Cout*KH*KW, H*W)     lane-dense output block
    a = x_ref[0]                       # (Cin, HW)
    wt = wT_ref[...]                   # (Nout, Cin)
    cin = a.shape[0]
    if use_vpu:
        # Tiny contraction dim: Cin broadcast-FMAs on the VPU. The MXU would be
        # <1% utilized at K=Cin and pays push/pop latency for nothing.
        acc = wt[:, 0:1] * a[0:1, :]
        for k in range(1, cin):
            acc = acc + wt[:, k : k + 1] * a[k : k + 1, :]
    else:
        acc = jnp.dot(wt, a, preferred_element_type=jnp.float32)
    if fuse_bias:
        acc = acc + b_ref[...]         # (Nout, 1) broadcast over lanes
    o_ref[0] = acc.astype(o_ref.dtype)


# ----------------------------------------------------------------------------
# Overlap-add scatter for the general (possibly overlapping) stride case.
# patches: (N, Cout, KH, KW, H, W)
# ----------------------------------------------------------------------------
def _overlap_add(patches, stride, OH, OW):
    N, Cout, KH, KW, H, W = patches.shape
    out = jnp.zeros((N, Cout, OH, OW), dtype=patches.dtype)
    for kh in range(KH):
        for kw in range(KW):
            out = out.at[
                :, :,
                kh : kh + (H - 1) * stride + 1 : stride,
                kw : kw + (W - 1) * stride + 1 : stride,
            ].add(patches[:, :, kh, kw])
    return out


# ----------------------------------------------------------------------------
# ConvTranspose2d forward (PyTorch semantics: padding=0, output_padding=0).
# ----------------------------------------------------------------------------
def conv_transpose2d_pallas(x, w, b, stride):
    # x: (N, Cin, H, W)   w: (Cin, Cout, KH, KW)   b: (Cout,)
    N, Cin, H, W = x.shape
    Cin2, Cout, KH, KW = w.shape
    assert Cin == Cin2
    OH = (H - 1) * stride + KH
    OW = (W - 1) * stride + KW
    HW = H * W
    Nout = Cout * KH * KW

    # Free / tiny re-layouts feeding the kernel (no big HBM transposes).
    x3 = x.reshape(N, Cin, HW)                          # contiguous reshape
    wT = jnp.transpose(w.reshape(Cin, Nout))            # (Nout, Cin), tiny
    b_rows = jnp.repeat(b, KH * KW).reshape(Nout, 1)    # bias per output row

    fuse_bias = (stride == KH) and (stride == KW)       # non-overlapping taps
    use_vpu = Cin <= 8

    kernel = functools.partial(
        _upsample_kernel, fuse_bias=fuse_bias, use_vpu=use_vpu
    )

    flops = 2 * N * HW * Cin * Nout
    bytes_accessed = 4 * (N * Cin * HW + Nout * Cin + Nout + N * Nout * HW)

    # NOTE: each grid step keeps the full (Cin, HW) / (Nout, HW) blocks resident;
    # for much larger Cin / H*W (v7x's 64 MiB VMEM) add HW/Cin tiling with an
    # f32 accumulator before scaling up.
    cT = pl.pallas_call(
        kernel,
        out_shape=jax.ShapeDtypeStruct((N, Nout, HW), jnp.float32),
        grid_spec=pltpu.PrefetchScalarGridSpec(
            num_scalar_prefetch=0,
            grid=(N,),                                  # N>=2 feeds both v7x TCs
            in_specs=[
                pl.BlockSpec((1, Cin, HW), lambda n: (n, 0, 0)),
                pl.BlockSpec((Nout, Cin), lambda n: (0, 0)),
                pl.BlockSpec((Nout, 1), lambda n: (0, 0)),
            ],
            out_specs=pl.BlockSpec((1, Nout, HW), lambda n: (n, 0, 0)),
        ),
        compiler_params=pltpu.CompilerParams(
            dimension_semantics=("parallel",),
        ),
        cost_estimate=pl.CostEstimate(
            flops=int(flops),
            transcendentals=0,
            bytes_accessed=int(bytes_accessed),
        ),
    )(x3, wT, b_rows)

    # Epilogue: kernel output is already (N, Cout, KH, KW, H, W)-ordered taps.
    patches = cT.reshape(N, Cout, KH, KW, H, W)
    if fuse_bias:
        # stride == kernel: pure interleave, no accumulation, bias already added.
        return jnp.transpose(patches, (0, 1, 4, 2, 5, 3)).reshape(N, Cout, OH, OW)
    # TODO(synk): for stride < kernel the overlapping scatter-add stays in XLA
    # (strided accumulate); only the Cin-reduction runs in the Pallas kernel.
    out = _overlap_add(patches, stride, OH, OW)
    return out + b[None, :, None, None]


# Pure-JAX reference (same math, no Pallas) for a correctness check.
def conv_transpose2d_ref(x, w, b, stride):
    N, Cin, H, W = x.shape
    _, Cout, KH, KW = w.shape
    OH = (H - 1) * stride + KH
    OW = (W - 1) * stride + KW
    patches = jnp.einsum("ncij,cokl->noklij", x, w)     # (N, Cout, KH, KW, H, W)
    return _overlap_add(patches, stride, OH, OW) + b[None, :, None, None]


class UpsamplePallas:
    """Pallas equivalent of nn.ConvTranspose2d(input_dim, output_dim, kernel, stride)."""

    def __init__(self, input_dim, output_dim, kernel, stride, key):
        self.stride = stride
        k_w, k_b = jax.random.split(key)
        # PyTorch default init: U(-1/sqrt(fan), 1/sqrt(fan)), fan = Cout * KH * KW
        fan = output_dim * kernel * kernel
        bound = 1.0 / (fan ** 0.5)
        self.weight = jax.random.uniform(
            k_w, (input_dim, output_dim, kernel, kernel),
            minval=-bound, maxval=bound, dtype=jnp.float32,
        )
        self.bias = jax.random.uniform(
            k_b, (output_dim,), minval=-bound, maxval=bound, dtype=jnp.float32,
        )

    def __call__(self, x):
        return conv_transpose2d_pallas(x, self.weight, self.bias, self.stride)


if __name__ == "__main__":
    key = jax.random.PRNGKey(0)
    k_x, k_p, k_x2, k_p2 = jax.random.split(key, 4)

    # Main case (matches the module defaults used in the harness):
    # batch=2, channels=4 -> 8, 16x16 -> 32x32, kernel=2, stride=2.
    input_dim, output_dim, kernel, stride = 4, 8, 2, 2
    x = jax.random.normal(k_x, (2, input_dim, 16, 16), dtype=jnp.float32)
    model = UpsamplePallas(input_dim, output_dim, kernel, stride, k_p)

    out = jax.jit(model.__call__)(x)
    out = jax.block_until_ready(out)
    assert out.shape == (2, output_dim, 32, 32), out.shape
    ref = conv_transpose2d_ref(x, model.weight, model.bias, stride)
    assert jnp.allclose(out, ref, atol=1e-5, rtol=1e-5)

    # Secondary check: general (overlapping) stride < kernel path.
    x2 = jax.random.normal(k_x2, (2, input_dim, 8, 8), dtype=jnp.float32)
    model2 = UpsamplePallas(input_dim, output_dim, 2, 1, k_p2)
    out2 = jax.block_until_ready(jax.jit(model2.__call__)(x2))
    ref2 = conv_transpose2d_ref(x2, model2.weight, model2.bias, 1)
    assert out2.shape == (2, output_dim, 9, 9), out2.shape
    assert jnp.allclose(out2, ref2, atol=1e-5, rtol=1e-5)

    print("KERNEL_OK")
</pallas_src>

<mosaic_0001>
module attributes {stable_mosaic.version = 11 : i64} {
  func.func @_upsample_kernel(%arg0: i32, %arg1: memref<1x4x256xf32, #tpu.memory_space<vmem>>, %arg2: memref<32x4xf32, #tpu.memory_space<vmem>>, %arg3: memref<32x1xf32, #tpu.memory_space<vmem>>, %arg4: memref<1x32x256xf32, #tpu.memory_space<vmem>>) attributes {dimension_semantics = [#tpu.dimension_semantics<parallel>], iteration_bounds = array<i64: 2>, scalar_prefetch = 0 : i64, scratch_operands = 0 : i64, tpu.core_type = #tpu.core_type<tc>, window_params = [{transform_indices = @transform_0, window_bounds = array<i64: 1, 4, 256>}, {pipeline_mode = #tpu.pipeline_mode<synchronous>, transform_indices = @transform_1, window_bounds = array<i64: 32, 4>}, {pipeline_mode = #tpu.pipeline_mode<synchronous>, transform_indices = @transform_2, window_bounds = array<i64: 32, 1>}, {transform_indices = @transform_3, window_bounds = array<i64: 1, 32, 256>}]} {
    %c0 = arith.constant 0 : index
    %c0_0 = arith.constant 0 : index
    %c0_1 = arith.constant 0 : index
    %0 = vector.load %arg1[%c0, %c0_0, %c0_1] : memref<1x4x256xf32, #tpu.memory_space<vmem>>, vector<1x4x256xf32>
    %1 = vector.shape_cast %0 : vector<1x4x256xf32> to vector<4x256xf32>
    %c0_2 = arith.constant 0 : index
    %c0_3 = arith.constant 0 : index
    %2 = vector.load %arg2[%c0_2, %c0_3] : memref<32x4xf32, #tpu.memory_space<vmem>>, vector<32x4xf32>
    %3 = vector.extract_strided_slice %2 {offsets = [0, 0], sizes = [32, 1], strides = [1, 1]} : vector<32x4xf32> to vector<32x1xf32>
    %4 = vector.extract_strided_slice %1 {offsets = [0, 0], sizes = [1, 256], strides = [1, 1]} : vector<4x256xf32> to vector<1x256xf32>
    %5 = vector.broadcast %3 : vector<32x1xf32> to vector<32x256xf32>
    %6 = vector.broadcast %4 : vector<1x256xf32> to vector<32x256xf32>
    %7 = arith.mulf %5, %6 : vector<32x256xf32>
    %8 = vector.extract_strided_slice %2 {offsets = [0, 1], sizes = [32, 1], strides = [1, 1]} : vector<32x4xf32> to vector<32x1xf32>
    %9 = vector.extract_strided_slice %1 {offsets = [1, 0], sizes = [1, 256], strides = [1, 1]} : vector<4x256xf32> to vector<1x256xf32>
    %10 = vector.broadcast %8 : vector<32x1xf32> to vector<32x256xf32>
    %11 = vector.broadcast %9 : vector<1x256xf32> to vector<32x256xf32>
    %12 = arith.mulf %10, %11 : vector<32x256xf32>
    %13 = arith.addf %7, %12 : vector<32x256xf32>
    %14 = vector.extract_strided_slice %2 {offsets = [0, 2], sizes = [32, 1], strides = [1, 1]} : vector<32x4xf32> to vector<32x1xf32>
    %15 = vector.extract_strided_slice %1 {offsets = [2, 0], sizes = [1, 256], strides = [1, 1]} : vector<4x256xf32> to vector<1x256xf32>
    %16 = vector.broadcast %14 : vector<32x1xf32> to vector<32x256xf32>
    %17 = vector.broadcast %15 : vector<1x256xf32> to vector<32x256xf32>
    %18 = arith.mulf %16, %17 : vector<32x256xf32>
    %19 = arith.addf %13, %18 : vector<32x256xf32>
    %20 = vector.extract_strided_slice %2 {offsets = [0, 3], sizes = [32, 1], strides = [1, 1]} : vector<32x4xf32> to vector<32x1xf32>
    %21 = vector.extract_strided_slice %1 {offsets = [3, 0], sizes = [1, 256], strides = [1, 1]} : vector<4x256xf32> to vector<1x256xf32>
    %22 = vector.broadcast %20 : vector<32x1xf32> to vector<32x256xf32>
    %23 = vector.broadcast %21 : vector<1x256xf32> to vector<32x256xf32>
    %24 = arith.mulf %22, %23 : vector<32x256xf32>
    %25 = arith.addf %19, %24 : vector<32x256xf32>
    %c0_4 = arith.constant 0 : index
    %c0_5 = arith.constant 0 : index
    %26 = vector.load %arg3[%c0_4, %c0_5] : memref<32x1xf32, #tpu.memory_space<vmem>>, vector<32x1xf32>
    %27 = vector.broadcast %26 : vector<32x1xf32> to vector<32x256xf32>
    %28 = arith.addf %25, %27 : vector<32x256xf32>
    %c0_6 = arith.constant 0 : index
    %c0_7 = arith.constant 0 : index
    %c0_8 = arith.constant 0 : index
    %29 = vector.load %arg4[%c0_6, %c0_7, %c0_8] : memref<1x32x256xf32, #tpu.memory_space<vmem>>, vector<1x32x256xf32>
    %30 = vector.shape_cast %29 : vector<1x32x256xf32> to vector<32x256xf32>
    %31 = vector.shape_cast %28 : vector<32x256xf32> to vector<1x32x256xf32>
    tpu.vector_store %arg4[%c0_6, %c0_7, %c0_8], %31 {strides = array<i32>} : memref<1x32x256xf32, #tpu.memory_space<vmem>>, vector<1x32x256xf32>,
    return
  }
  func.func @transform_0(%arg0: i32) -> (i32, i32, i32) {
    %c0_i32 = arith.constant 0 : i32
    %c0_i32_0 = arith.constant 0 : i32
    %c0_i32_1 = arith.constant 0 : i32
    return %arg0, %c0_i32, %c0_i32_0 : i32, i32, i32
  }
  func.func @transform_1(%arg0: i32) -> (i32, i32) {
    %c0_i32 = arith.constant 0 : i32
    %c0_i32_0 = arith.constant 0 : i32
    %c0_i32_1 = arith.constant 0 : i32
    return %c0_i32, %c0_i32_0 : i32, i32
  }
  func.func @transform_2(%arg0: i32) -> (i32, i32) {
    %c0_i32 = arith.constant 0 : i32
    %c0_i32_0 = arith.constant 0 : i32
    %c0_i32_1 = arith.constant 0 : i32
    return %c0_i32, %c0_i32_0 : i32, i32
  }
  func.func @transform_3(%arg0: i32) -> (i32, i32, i32) {
    %c0_i32 = arith.constant 0 : i32
    %c0_i32_0 = arith.constant 0 : i32
    %c0_i32_1 = arith.constant 0 : i32
    return %arg0, %c0_i32, %c0_i32_0 : i32, i32, i32
  }
}

</mosaic_0001>

<bundles_post_ra>
// kernel: a_call__.1
= control target key start
LH: loop header
LB: loop body
LE: loop exit
PB: predicated region body
PF: predicated region fallthrough
CT: control target
= control target key end

     0   :  { %s535_s12 = smov 0   ;;  %s606_s0 = inlined_call_operand.vmem [shape: f32[2,4,256], index: 0, kind: input, shape index: {}]   ;;  %s607_s1 = inlined_call_operand.vmem [shape: f32[32,4], index: 1, kind: input, shape index: {}]   ;;  %s608_s2 = inlined_call_operand.vmem [shape: f32[32,1], index: 2, kind: input, shape index: {}]   ;;  %s609_s3 = inlined_call_operand.vmem [shape: f32[2,32,256], index: 3, kind: output, shape index: {}]  }
   0x1 LB: > { %s468_s13 = sadd.s32 4294967295, %s509_s12   ;;  %p472_p0 = scmp.ge.s32.totalorder %s509_s12, 1  ;;  %s509_s12 = sphi %s535_s12, %s13_s12  }
   0x2   : > { %p137_p1 = scmp.lt.s32.totalorder %s509_s12, 3 }
   0x4   : > { %p138_p2 = pnand %p472_p0, %p137_p1 }
   0x5   : > { %v174_v0 = vld [vmem:[%s607_s1 + $0x10] sm:$0xff] (!%p138_p2)  ;;  %v172_v1 = vld [vmem:[%s607_s1] sm:$0xff] (!%p138_p2)  ;;  %v511_v2 = vmov (!%p138_p2), 0   ;;  %v175_v3 = vld [vmem:[%s607_s1 + $0x18] sm:$0xff] (!%p138_p2)  ;;  %v512_v5 = vmov (!%p138_p2), 1   ;;  %v513_v6 = vmov (!%p138_p2), 2   ;;  %v197_v16 = vlaneseq (!%p138_p2) }
   0x6   : > { %141 = sbr.rel (%p138_p2) target bundleno = 186 (0xba), region = 32  ;;  %494 = vset.pattern.permute.xlu1 (!%p138_p2), %v511_v2  ;;  %493 = vset.pattern.permute.xlu0 (!%p138_p2), %v511_v2  ;;  %v173_v4 = vld [vmem:[%s607_s1 + $0x8] sm:$0xff] (!%p138_p2)  ;;  %v514_v7 = vmov (!%p138_p2), 3   ;;  %v373_v9 = vld [vmem:[%s608_s2] sm:$0xff] (!%p138_p2)  ;;  %v375_v10 = vld [vmem:[%s608_s2 + $0x10] sm:$0xff] (!%p138_p2)  ;;  %p161_p3 = scmp.lt.s32.totalorder (!%p138_p2), %s468_s13, 1 }
   0x7   : > { %188 = vperm.xlu1 (!%p138_p2), %494, %v174_v0   ;;  %178 = vperm.xlu0 (!%p138_p2), %493, %v172_v1   ;;  %v374_v8 = vld [vmem:[%s608_s2 + $0x8] sm:$0xff] (!%p138_p2)  ;;  %v376_v11 = vld [vmem:[%s608_s2 + $0x18] sm:$0xff] (!%p138_p2)  ;;  %v198_v19 = vshrl.u32 (!%p138_p2), %v197_v16, 7 }
   0x9   : > { %v241_v22 = vsub.s32 (!%p138_p2), 1, %v198_v19  ;;  %v245_v23 = vsub.s32 (!%p138_p2), 5, %v198_v19  ;;  %v199_v24 = vsub.s32 (!%p138_p2), 0, %v198_v19  ;;  %v203_v25 = vsub.s32 (!%p138_p2), 4, %v198_v19 }
   0xa   : > { %v291_v26 = vsub.s32 (!%p138_p2), 2, %v198_v19  ;;  %v295_v27 = vsub.s32 (!%p138_p2), 6, %v198_v19  ;;  %v341_v37 = vsub.s32 (!%p138_p2), 3, %v198_v19  ;;  %v345_v38 = vsub.s32 (!%p138_p2), 7, %v198_v19 }
   0xb   : > { %193 = vperm.xlu1 (!%p138_p2), %494, %v175_v3   ;;  %183 = vperm.xlu0 (!%p138_p2), %493, %v173_v4  }
   0xd   : > { %s611_s13 = smov (!%p161_p3, %s468_s13), 1 }
   0xe   : > { %s479_s30 = sshll.u32 %s611_s13, 3  ;;  %s480_s7 = sshll.u32 %s611_s13, 6 }
   0xf   : > { %496 = vset.pattern.permute.xlu1 %v512_v5  ;;  %495 = vset.pattern.permute.xlu0 %v512_v5  ;;  %s165_s6 = scalar_lea.vmem %s606_s0, %s479_s30  ;;  %s591_s10 = scalar_lea.vmem %s609_s3, %s480_s7 }
  0x10   : > { %228 = vperm.xlu1 %496, %v173_v4   ;;  %224 = vperm.xlu0 %495, %v172_v1   ;;  %v171_v28 = vld [vmem:[%s165_s6] sm:$0xff] }
  0x11   : > { %v242_v29 = vrot.slane %v171_v28, %v241_v22  ;;  %v246_v30 = vrot.slane %v171_v28, %v245_v23  ;;  %v200_v33 = vrot.slane %v171_v28, %v199_v24  ;;  %v204_v34 = vrot.slane %v171_v28, %v203_v25 }
  0x12   : > { %v292_v35 = vrot.slane %v171_v28, %v291_v26  ;;  %v296_v36 = vrot.slane %v171_v28, %v295_v27  ;;  %v342_v47 = vrot.slane %v171_v28, %v341_v37  ;;  %v346_v48 = vrot.slane %v171_v28, %v345_v38 }
  0x13   : > { %v252_v39 = vrot.slane %v242_v29, %v241_v22  ;;  %v256_v40 = vrot.slane %v246_v30, %v241_v22  ;;  %v210_v43 = vrot.slane %v200_v33, %v199_v24  ;;  %v214_v44 = vrot.slane %v204_v34, %v199_v24 }
  0x14   : > { %232 = vperm.xlu1 %496, %v174_v0   ;;  %236 = vperm.xlu0 %495, %v175_v3   ;;  %v302_v45 = vrot.slane %v292_v35, %v291_v26  ;;  %v306_v46 = vrot.slane %v296_v36, %v291_v26  ;;  %v352_v63 = vrot.slane %v342_v47, %v341_v37 }
  0x18   : > { %497 = vset.pattern.permute.xlu1 %v513_v6  ;;  %498 = vset.pattern.permute.xlu0 %v513_v6 }
  0x19   : > { %274 = vperm.xlu1 %497, %v172_v1   ;;  %278 = vperm.xlu0 %498, %v173_v4  }
  0x1d   : > { %282 = vperm.xlu1 %497, %v174_v0   ;;  %499 = vset.pattern.permute.xlu0 %v514_v7 }
  0x1e   : > { %324 = vperm.xlu0 %499, %v172_v1  }
  0x21   : > { %286 = vperm.xlu1 %497, %v175_v3  }
  0x22   : > { %336 = vperm.xlu0 %499, %v175_v3  }
  0x25   : > { %500 = vset.pattern.permute.xlu1 %v514_v7 }
  0x26   : > { %328 = vperm.xlu1 %500, %v173_v4   ;;  %502 = vset.pattern.permute.xlu0 %v511_v2 }
  0x27   : > { %384 = vperm.xlu0 %502, %v374_v8  }
  0x2a   : > { %332 = vperm.xlu1 %500, %v174_v0   ;;  %v356_v0 = vrot.slane %v346_v48, %v341_v37 }
  0x2e   : > { %501 = vset.pattern.permute.xlu1 %v511_v2 }
  0x2f   : > { %379 = vperm.xlu1 %501, %v373_v9  }
  0x33   : > { %389 = vperm.xlu1 %501, %v375_v10  }
  0x37   : > { %394 = vperm.xlu1 %501, %v376_v11  }
  0x86   : > { %v567_v12 = vpop.permute.xlu1 %188  ;;  %v179_v13 = vpop.permute.xlu0 %178 }
  0x87   : > { %v215_v54 = vmul.f32 %v210_v43, %v179_v13  ;;  %v216_v55 = vmul.f32 %v214_v44, %v179_v13  ;;  %v219_v19 = vmul.f32 %v210_v43, %v567_v12  ;;  %v220_v22 = vmul.f32 %v214_v44, %v567_v12 }
  0x8a   : > { %v571_v14 = vpop.permute.xlu1 %193  ;;  %v184_v15 = vpop.permute.xlu0 %183 }
  0x8b   : > { %v217_v49 = vmul.f32 %v210_v43, %v184_v15  ;;  %v218_v50 = vmul.f32 %v214_v44, %v184_v15  ;;  %v221_v29 = vmul.f32 %v210_v43, %v571_v14  ;;  %v222_v12 = vmul.f32 %v214_v44, %v571_v14 }
  0x8f   : > { %v229_v17 = vpop.permute.xlu1 %228  ;;  %v225_v18 = vpop.permute.xlu0 %224 }
  0x90   : > { %v259_v51 = vmul.f32 %v252_v39, %v229_v17  ;;  %v260_v52 = vmul.f32 %v256_v40, %v229_v17  ;;  %v257_v56 = vmul.f32 %v252_v39, %v225_v18  ;;  %v258_v57 = vmul.f32 %v256_v40, %v225_v18 }
  0x92   : > { %v267_v61 = vadd.f32 %v259_v51, %v217_v49  ;;  %v268_v62 = vadd.f32 %v260_v52, %v218_v50  ;;  %v265_v1 = vadd.f32 %v257_v56, %v215_v54  ;;  %v266_v2 = vadd.f32 %v258_v57, %v216_v55 }
  0x93   : > { %v233_v20 = vpop.permute.xlu1 %232  ;;  %v578_v21 = vpop.permute.xlu0 %236 }
  0x94   : > { %v261_v10 = vmul.f32 %v252_v39, %v233_v20  ;;  %v262_v11 = vmul.f32 %v256_v40, %v233_v20  ;;  %v263_v23 = vmul.f32 %v252_v39, %v578_v21  ;;  %v264_v24 = vmul.f32 %v256_v40, %v578_v21 }
  0x96   : > { %v270_v21 = vadd.f32 %v262_v11, %v220_v22  ;;  %v271_v39 = vadd.f32 %v263_v23, %v221_v29  ;;  %v272_v40 = vadd.f32 %v264_v24, %v222_v12 }
  0x98   : > { %v275_v31 = vpop.permute.xlu1 %274  ;;  %v279_v32 = vpop.permute.xlu0 %278 }
  0x99   : > { %v309_v58 = vmul.f32 %v302_v45, %v279_v32  ;;  %v310_v59 = vmul.f32 %v306_v46, %v279_v32  ;;  %v307_v3 = vmul.f32 %v302_v45, %v275_v31  ;;  %v308_v4 = vmul.f32 %v306_v46, %v275_v31 }
  0x9a   : > { %v269_v32 = vadd.f32 %v261_v10, %v219_v19 }
  0x9b   : > { %v317_v6 = vadd.f32 %v309_v58, %v267_v61  ;;  %v318_v7 = vadd.f32 %v310_v59, %v268_v62  ;;  %v315_v20 = vadd.f32 %v307_v3, %v265_v1  ;;  %v316_v26 = vadd.f32 %v308_v4, %v266_v2 }
  0x9c   : > { %v283_v41 = vpop.permute.xlu1 %282 }
  0x9d   : > { %v325_v42 = vpop.permute.xlu0 %324  ;;  %v311_v30 = vmul.f32 %v302_v45, %v283_v41  ;;  %v312_v31 = vmul.f32 %v306_v46, %v283_v41 }
  0x9e   : > { %v357_v15 = vmul.f32 %v352_v63, %v325_v42  ;;  %v358_v16 = vmul.f32 %v356_v0, %v325_v42 }
  0x9f   : > { %v319_v43 = vadd.f32 %v311_v30, %v269_v32  ;;  %v320_v14 = vadd.f32 %v312_v31, %v270_v21 }
  0xa0   : > { %v287_v53 = vpop.permute.xlu1 %286  ;;  %v365_v33 = vadd.f32 %v357_v15, %v315_v20  ;;  %v366_v34 = vadd.f32 %v358_v16, %v316_v26 }
  0xa1   : > { %v337_v60 = vpop.permute.xlu0 %336  ;;  %v313_v35 = vmul.f32 %v302_v45, %v287_v53  ;;  %v314_v36 = vmul.f32 %v306_v46, %v287_v53 }
  0xa2   : > { %v363_v47 = vmul.f32 %v352_v63, %v337_v60  ;;  %v364_v48 = vmul.f32 %v356_v0, %v337_v60 }
  0xa3   : > { %v321_v49 = vadd.f32 %v313_v35, %v271_v39  ;;  %v322_v50 = vadd.f32 %v314_v36, %v272_v40 }
  0xa5   : > { %v329_v5 = vpop.permute.xlu1 %328  ;;  %v371_v54 = vadd.f32 %v363_v47, %v321_v49  ;;  %v372_v55 = vadd.f32 %v364_v48, %v322_v50 }
  0xa6   : > { %v359_v8 = vmul.f32 %v352_v63, %v329_v5  ;;  %v360_v9 = vmul.f32 %v356_v0, %v329_v5  ;;  %v385_v13 = vpop.permute.xlu0 %384 }
  0xa8   : > { %v367_v17 = vadd.f32 %v359_v8, %v317_v6  ;;  %v368_v18 = vadd.f32 %v360_v9, %v318_v7 }
  0xa9   : > { %v333_v25 = vpop.permute.xlu1 %332 }
  0xaa   : > { %v399_v27 = vadd.f32 %v385_v13, %v367_v17  ;;  %v400_v28 = vadd.f32 %v385_v13, %v368_v18  ;;  %v361_v37 = vmul.f32 %v352_v63, %v333_v25  ;;  %v362_v38 = vmul.f32 %v356_v0, %v333_v25 }
  0xac   : > { %407 = vst [vmem:[%s591_s10 + $0x10] sm:$0xff] %v399_v27  ;;  %408 = vst [vmem:[%s591_s10 + $0x18] sm:$0xff] %v400_v28  ;;  %v369_v45 = vadd.f32 %v361_v37, %v319_v43  ;;  %v370_v46 = vadd.f32 %v362_v38, %v320_v14 }
  0xae   : > { %v380_v42 = vpop.permute.xlu1 %379 }
  0xaf   : > { %v397_v41 = vadd.f32 %v380_v42, %v365_v33  ;;  %v398_v44 = vadd.f32 %v380_v42, %v366_v34 }
  0xb1   : > { %405 = vst [vmem:[%s591_s10] sm:$0xff] %v397_v41  ;;  %406 = vst [vmem:[%s591_s10 + $0x8] sm:$0xff] %v398_v44 }
  0xb2   : > { %v390_v51 = vpop.permute.xlu1 %389 }
  0xb3   : > { %v401_v52 = vadd.f32 %v390_v51, %v369_v45  ;;  %v402_v53 = vadd.f32 %v390_v51, %v370_v46 }
  0xb5   : > { %409 = vst [vmem:[%s591_s10 + $0x20] sm:$0xff] %v401_v52  ;;  %410 = vst [vmem:[%s591_s10 + $0x28] sm:$0xff] %v402_v53 }
  0xb6   : > { %v395_v56 = vpop.permute.xlu1 %394 }
  0xb7   : > { %v403_v57 = vadd.f32 %v395_v56, %v371_v54  ;;  %v404_v58 = vadd.f32 %v395_v56, %v372_v55 }
  0xb9   : > { %411 = vst [vmem:[%s591_s10 + $0x30] sm:$0xff] %v403_v57  ;;  %412 = vst [vmem:[%s591_s10 + $0x38] sm:$0xff] %v404_v58 }
  0xba PF: > { %s13_s12 = sadd.s32 1, %s509_s12  }
  0xbb   : > { %p10_p4 = scmp.ge.s32.totalorder %s13_s12, 4  }
  0xbd   :  { %12 = sbr.rel (!%p10_p4) target bundleno = 1 (0x1), region = 62 }

</bundles_post_ra>
